<compile_context>
chip_gen: v6e
topology: v6e:2x2x1
jax: 0.10.0
libtpu: 0.0.40
codegen_flags: <defaults>
</compile_context>

<pallas_src>
import functools

import jax
import jax.numpy as jnp
import numpy as np
from jax import lax
from jax.experimental import pallas as pl
from jax.experimental.pallas import tpu as pltpu


def _round_up(x, m):
    return (x + m - 1) // m * m


def _fused_kernel(x_ref, w_ref, p_ref, mask_ref, o_ref,
                  sum_ref, sumsq_ref, scale_ref, shift_ref, *,
                  tap_offsets, q_out, inv_count, negative_slope, eps):
    """Grid = (pass, image).  Pass 0 accumulates BN stats, pass 1 writes output.

    x_ref:    (Cin, Qin)         bf16  flat zero-padded per-image slab
    w_ref:    (Cout, kh*kw*Cin)  bf16  packed weights, K ordered (ki, kj, c)
    p_ref:    (Cout, 3)          f32   [conv bias | bn gamma | bn beta]
    mask_ref: (1, Qout)          f32   1.0 at real output pixels (batch-invariant)
    o_ref:    (Cout, Qout)       f32
    """
    pss = pl.program_id(0)          # 0 = stats pass, 1 = normalize pass
    img = pl.program_id(1)
    n_img = pl.num_programs(1)

    @pl.when(jnp.logical_and(pss == 0, img == 0))
    def _init():
        sum_ref[...] = jnp.zeros_like(sum_ref)
        sumsq_ref[...] = jnp.zeros_like(sumsq_ref)

    # ---- fused im2col + conv: one consolidated MXU matmul -------------------
    # Each tap is a statically lane-shifted slice of the flat slab; stacking all
    # kh*kw taps along K gives a single (Cout, K) x (K, Qout) matmul (one MXU
    # push/drain) instead of kh*kw tiny K=Cin dots plus f32 accumulate adds.
    patch = jnp.concatenate(
        [x_ref[:, pl.ds(off, q_out)] for off in tap_offsets], axis=0)   # bf16
    acc = jnp.dot(w_ref[...], patch, preferred_element_type=jnp.float32)

    bias = p_ref[:, 0:1]                                 # (Cout, 1)
    y = acc + bias
    y = jnp.maximum(y, negative_slope * y)               # LeakyReLU (0 < slope < 1)

    # ---- pass 0: accumulate per-channel sum / sum-of-squares ----------------
    @pl.when(pss == 0)
    def _accumulate():
        ym = y * mask_ref[...]                           # halo / round-up excluded
        sum_ref[...] += jnp.sum(ym, axis=1, keepdims=True)
        sumsq_ref[...] += jnp.sum(ym * ym, axis=1, keepdims=True)

    # finalize batch stats once, after the last image of pass 0
    @pl.when(jnp.logical_and(pss == 0, img == n_img - 1))
    def _finalize_stats():
        gamma = p_ref[:, 1:2]
        beta = p_ref[:, 2:3]
        mean = sum_ref[...] * inv_count
        var = sumsq_ref[...] * inv_count - mean * mean   # biased variance
        # TODO(synk): shifted-moment accumulation if |mean| >> std (cancellation).
        scale = lax.rsqrt(var + eps) * gamma             # EUP rsqrt, no divides
        scale_ref[...] = scale
        shift_ref[...] = beta - mean * scale             # (y-mean)*s+b  ->  y*s+shift

    # ---- pass 1: normalize + lane-dense unmasked store ----------------------
    @pl.when(pss == 1)
    def _normalize():
        o_ref[...] = (y * scale_ref[...] + shift_ref[...]).astype(o_ref.dtype)


def conv2d_leakyrelu_bn(x_nchw, conv_w, conv_b, bn_gamma, bn_beta, *,
                        padding, dilation, negative_slope, eps=1e-5):
    """x_nchw: (N, Cin, H, W); conv_w: (Cout, Cin, kh, kw) -> (N, Cout, Ho, Wo)."""
    n, cin, h, w = x_nchw.shape
    cout, _, kh, kw = conv_w.shape
    assert 0.0 < negative_slope < 1.0, "max-trick LeakyReLU requires 0 < slope < 1"

    ho = h + 2 * padding - dilation * (kh - 1)
    wo = w + 2 * padding - dilation * (kw - 1)
    hp, wp = h + 2 * padding, w + 2 * padding

    m_img = hp * wp                                     # flattened per-image domain
    q_out = _round_up(m_img, 128)                       # lane-dense output block
    max_off = (kh - 1) * dilation * wp + (kw - 1) * dilation
    q_in = _round_up(q_out + max_off, 128)

    # ---- layout glue: spatial zero-pad + flatten (NO transpose, NO im2col dup) ---
    x_p = jnp.pad(x_nchw, ((0, 0), (0, 0), (padding, padding), (padding, padding)))
    x_flat = jnp.pad(x_p.reshape(n, cin, m_img), ((0, 0), (0, 0), (0, q_in - m_img)))
    x_flat = x_flat.astype(jnp.bfloat16)                # bf16 MXU operand

    # weights -> (Cout, kh*kw*Cin), K ordered (ki, kj, c) to match tap stacking
    w2 = jnp.transpose(conv_w, (0, 2, 3, 1)).reshape(cout, kh * kw * cin)
    w2 = w2.astype(jnp.bfloat16)

    # conv bias / BN gamma / BN beta packed into one (Cout, 3) block (single DMA)
    params = jnp.stack([conv_b, bn_gamma, bn_beta], axis=1).astype(jnp.float32)

    # batch-invariant validity mask over one image's flattened positions (tiny,
    # fetched once and resident; built on host, zero runtime cost)
    mask_np = np.zeros((hp, wp), np.float32)
    mask_np[:ho, :wo] = 1.0
    mask = jnp.asarray(np.pad(mask_np.reshape(1, m_img),
                              ((0, 0), (0, q_out - m_img))))

    tap_offsets = tuple(ki * dilation * wp + kj * dilation
                        for ki in range(kh) for kj in range(kw))

    kernel = functools.partial(
        _fused_kernel, tap_offsets=tap_offsets, q_out=q_out,
        inv_count=1.0 / float(n * ho * wo),
        negative_slope=float(negative_slope), eps=float(eps))

    out = pl.pallas_call(
        kernel,
        out_shape=jax.ShapeDtypeStruct((n, cout, q_out), jnp.float32),
        grid=(2, n),                                    # (pass, image)
        in_specs=[
            pl.BlockSpec((None, cin, q_in), lambda p, i: (i, 0, 0)),   # per-image slab
            pl.BlockSpec((cout, kh * kw * cin), lambda p, i: (0, 0)),  # weights (resident)
            pl.BlockSpec((cout, 3), lambda p, i: (0, 0)),              # bias|gamma|beta
            pl.BlockSpec((1, q_out), lambda p, i: (0, 0)),             # validity mask
        ],
        # i*p: during the stats pass the output block index stays 0 and is never
        # flushed; the normalize pass then writes every block exactly once.
        out_specs=pl.BlockSpec((None, cout, q_out), lambda p, i: (i * p, 0, 0)),
        scratch_shapes=[pltpu.VMEM((cout, 1), jnp.float32)] * 4,       # sum, sumsq, scale, shift
        compiler_params=pltpu.CompilerParams(
            dimension_semantics=("arbitrary", "arbitrary")),
    )(x_flat, w2, params, mask)

    # (N, Cout, Qout) -> (N, Cout, Ho, Wo): drop halo / round-up columns (no transpose)
    return out[:, :, :m_img].reshape(n, cout, hp, wp)[:, :, :ho, :wo]


def _reference(x, conv_w, conv_b, bn_gamma, bn_beta, *, padding, dilation,
               negative_slope, eps=1e-5):
    y = lax.conv_general_dilated(
        x, conv_w, window_strides=(1, 1),
        padding=[(padding, padding), (padding, padding)],
        rhs_dilation=(dilation, dilation),
        dimension_numbers=("NCHW", "OIHW", "NCHW"))
    y = y + conv_b[None, :, None, None]
    y = jnp.where(y > 0, y, negative_slope * y)
    mean = jnp.mean(y, axis=(0, 2, 3), keepdims=True)
    var = jnp.mean((y - mean) ** 2, axis=(0, 2, 3), keepdims=True)
    return ((y - mean) / jnp.sqrt(var + eps)) * bn_gamma[None, :, None, None] \
        + bn_beta[None, :, None, None]


if __name__ == "__main__":
    # module hyper-params
    input_channels, layer_width = 4, 8
    kernel_size, padding, dilation = 3, 1, 1
    negative_slope = 0.2

    key = jax.random.PRNGKey(0)
    kx, kw, kb = jax.random.split(key, 3)

    # small deterministic shapes: batch=2, channels=4, spatial=16
    x = jax.random.normal(kx, (2, input_channels, 16, 16), dtype=jnp.float32)

    # deterministic synthetic parameters (shapes per nn.Conv2d / nn.BatchNorm2d)
    fan_in = input_channels * kernel_size * kernel_size
    bound = 1.0 / np.sqrt(fan_in)
    conv_w = jax.random.uniform(kw, (layer_width, input_channels, kernel_size, kernel_size),
                                minval=-bound, maxval=bound, dtype=jnp.float32)
    conv_b = jax.random.uniform(kb, (layer_width,), minval=-bound, maxval=bound,
                                dtype=jnp.float32)
    bn_gamma = jnp.ones((layer_width,), jnp.float32)   # BatchNorm2d default affine init
    bn_beta = jnp.zeros((layer_width,), jnp.float32)

    out = conv2d_leakyrelu_bn(x, conv_w, conv_b, bn_gamma, bn_beta,
                              padding=padding, dilation=dilation,
                              negative_slope=negative_slope)
    out = jax.block_until_ready(out)

    ref = _reference(x, conv_w, conv_b, bn_gamma, bn_beta,
                     padding=padding, dilation=dilation,
                     negative_slope=negative_slope)
    # tolerance loosened vs the pure-f32 version: matmul operands are bf16 on the
    # MXU (accumulation and BN stats remain f32).
    np.testing.assert_allclose(np.asarray(out), np.asarray(ref), rtol=5e-2, atol=5e-2)

    print("KERNEL_OK")
</pallas_src>

<mosaic_0001>
module attributes {stable_mosaic.version = 11 : i64} {
  func.func @_fused_kernel(%arg0: i32, %arg1: i32, %arg2: memref<1x4x512xbf16, #tpu.memory_space<vmem>>, %arg3: memref<8x36xbf16, #tpu.memory_space<vmem>>, %arg4: memref<8x3xf32, #tpu.memory_space<vmem>>, %arg5: memref<1x384xf32, #tpu.memory_space<vmem>>, %arg6: memref<1x8x384xf32, #tpu.memory_space<vmem>>, %arg7: memref<8x1xf32, #tpu.memory_space<vmem>>, %arg8: memref<8x1xf32, #tpu.memory_space<vmem>>, %arg9: memref<8x1xf32, #tpu.memory_space<vmem>>, %arg10: memref<8x1xf32, #tpu.memory_space<vmem>>) attributes {dimension_semantics = [#tpu.dimension_semantics<arbitrary>, #tpu.dimension_semantics<arbitrary>], iteration_bounds = array<i64: 2, 2>, scalar_prefetch = 0 : i64, scratch_operands = 4 : i64, tpu.core_type = #tpu.core_type<tc>, window_params = [{transform_indices = @transform_0, window_bounds = array<i64: 1, 4, 512>}, {pipeline_mode = #tpu.pipeline_mode<synchronous>, transform_indices = @transform_1, window_bounds = array<i64: 8, 36>}, {pipeline_mode = #tpu.pipeline_mode<synchronous>, transform_indices = @transform_2, window_bounds = array<i64: 8, 3>}, {pipeline_mode = #tpu.pipeline_mode<synchronous>, transform_indices = @transform_3, window_bounds = array<i64: 1, 384>}, {transform_indices = @transform_4, window_bounds = array<i64: 1, 8, 384>}]} {
    %c0_i32 = arith.constant 0 : i32
    %0 = arith.cmpi eq, %arg0, %c0_i32 : i32
    %c0_i32_0 = arith.constant 0 : i32
    %1 = arith.cmpi eq, %arg1, %c0_i32_0 : i32
    %2 = arith.andi %0, %1 : i1
    %3 = arith.extui %2 : i1 to i32
    %c0_i32_1 = arith.constant 0 : i32
    %4 = arith.cmpi ne, %3, %c0_i32_1 : i32
    scf.if %4 {
      %cst_31 = arith.constant 0.000000e+00 : f32
      %43 = vector.broadcast %cst_31 : f32 to vector<8x1xf32>
      %c0_32 = arith.constant 0 : index
      %c0_33 = arith.constant 0 : index
      %44 = vector.load %arg7[%c0_32, %c0_33] : memref<8x1xf32, #tpu.memory_space<vmem>>, vector<8x1xf32>
      tpu.vector_store %arg7[%c0_32, %c0_33], %43 {strides = array<i32>} : memref<8x1xf32, #tpu.memory_space<vmem>>, vector<8x1xf32>,
      %cst_34 = arith.constant 0.000000e+00 : f32
      %45 = vector.broadcast %cst_34 : f32 to vector<8x1xf32>
      %c0_35 = arith.constant 0 : index
      %c0_36 = arith.constant 0 : index
      %46 = vector.load %arg8[%c0_35, %c0_36] : memref<8x1xf32, #tpu.memory_space<vmem>>, vector<8x1xf32>
      tpu.vector_store %arg8[%c0_35, %c0_36], %45 {strides = array<i32>} : memref<8x1xf32, #tpu.memory_space<vmem>>, vector<8x1xf32>,
    } else {
    }
    %c0 = arith.constant 0 : index
    %c0_2 = arith.constant 0 : index
    %c0_3 = arith.constant 0 : index
    %5 = vector.load %arg2[%c0, %c0_2, %c0_3] : memref<1x4x512xbf16, #tpu.memory_space<vmem>>, vector<1x4x384xbf16>
    %6 = vector.shape_cast %5 : vector<1x4x384xbf16> to vector<4x384xbf16>
    %c0_4 = arith.constant 0 : index
    %c0_5 = arith.constant 0 : index
    %c1 = arith.constant 1 : index
    %7 = vector.load %arg2[%c0_4, %c0_5, %c1] : memref<1x4x512xbf16, #tpu.memory_space<vmem>>, vector<1x4x384xbf16>
    %8 = vector.shape_cast %7 : vector<1x4x384xbf16> to vector<4x384xbf16>
    %c0_6 = arith.constant 0 : index
    %c0_7 = arith.constant 0 : index
    %c2 = arith.constant 2 : index
    %9 = vector.load %arg2[%c0_6, %c0_7, %c2] : memref<1x4x512xbf16, #tpu.memory_space<vmem>>, vector<1x4x384xbf16>
    %10 = vector.shape_cast %9 : vector<1x4x384xbf16> to vector<4x384xbf16>
    %c0_8 = arith.constant 0 : index
    %c0_9 = arith.constant 0 : index
    %c18 = arith.constant 18 : index
    %11 = vector.load %arg2[%c0_8, %c0_9, %c18] : memref<1x4x512xbf16, #tpu.memory_space<vmem>>, vector<1x4x384xbf16>
    %12 = vector.shape_cast %11 : vector<1x4x384xbf16> to vector<4x384xbf16>
    %c0_10 = arith.constant 0 : index
    %c0_11 = arith.constant 0 : index
    %c19 = arith.constant 19 : index
    %13 = vector.load %arg2[%c0_10, %c0_11, %c19] : memref<1x4x512xbf16, #tpu.memory_space<vmem>>, vector<1x4x384xbf16>
    %14 = vector.shape_cast %13 : vector<1x4x384xbf16> to vector<4x384xbf16>
    %c0_12 = arith.constant 0 : index
    %c0_13 = arith.constant 0 : index
    %c20 = arith.constant 20 : index
    %15 = vector.load %arg2[%c0_12, %c0_13, %c20] : memref<1x4x512xbf16, #tpu.memory_space<vmem>>, vector<1x4x384xbf16>
    %16 = vector.shape_cast %15 : vector<1x4x384xbf16> to vector<4x384xbf16>
    %c0_14 = arith.constant 0 : index
    %c0_15 = arith.constant 0 : index
    %c36 = arith.constant 36 : index
    %17 = vector.load %arg2[%c0_14, %c0_15, %c36] : memref<1x4x512xbf16, #tpu.memory_space<vmem>>, vector<1x4x384xbf16>
    %18 = vector.shape_cast %17 : vector<1x4x384xbf16> to vector<4x384xbf16>
    %c0_16 = arith.constant 0 : index
    %c0_17 = arith.constant 0 : index
    %c37 = arith.constant 37 : index
    %19 = vector.load %arg2[%c0_16, %c0_17, %c37] : memref<1x4x512xbf16, #tpu.memory_space<vmem>>, vector<1x4x384xbf16>
    %20 = vector.shape_cast %19 : vector<1x4x384xbf16> to vector<4x384xbf16>
    %c0_18 = arith.constant 0 : index
    %c0_19 = arith.constant 0 : index
    %c38 = arith.constant 38 : index
    %21 = vector.load %arg2[%c0_18, %c0_19, %c38] : memref<1x4x512xbf16, #tpu.memory_space<vmem>>, vector<1x4x384xbf16>
    %22 = vector.shape_cast %21 : vector<1x4x384xbf16> to vector<4x384xbf16>
    %23 = tpu.concatenate %6, %8, %10, %12, %14, %16, %18, %20, %22 in 0 : vector<4x384xbf16>, vector<4x384xbf16>, vector<4x384xbf16>, vector<4x384xbf16>, vector<4x384xbf16>, vector<4x384xbf16>, vector<4x384xbf16>, vector<4x384xbf16>, vector<4x384xbf16> -> vector<36x384xbf16>
    %c0_20 = arith.constant 0 : index
    %c0_21 = arith.constant 0 : index
    %24 = vector.load %arg3[%c0_20, %c0_21] : memref<8x36xbf16, #tpu.memory_space<vmem>>, vector<8x36xbf16>
    %cst = arith.constant dense<0.000000e+00> : vector<8x384xf32>
    %25 = tpu.matmul %24, %23, %cst {dimension_numbers = #tpu.dot_dimension_numbers<[1], [0], [0], [1], [0, 0, 1, 1], [], []>} : vector<8x36xbf16>, vector<36x384xbf16>, vector<8x384xf32> -> vector<8x384xf32>
    %c0_22 = arith.constant 0 : index
    %c0_23 = arith.constant 0 : index
    %26 = vector.load %arg4[%c0_22, %c0_23] : memref<8x3xf32, #tpu.memory_space<vmem>>, vector<8x1xf32>
    %27 = vector.broadcast %26 : vector<8x1xf32> to vector<8x384xf32>
    %28 = arith.addf %25, %27 : vector<8x384xf32>
    %cst_24 = arith.constant 2.000000e-01 : f32
    %29 = vector.broadcast %cst_24 : f32 to vector<8x384xf32>
    %30 = arith.mulf %29, %28 : vector<8x384xf32>
    %31 = arith.maximumf %28, %30 : vector<8x384xf32>
    %c0_i32_25 = arith.constant 0 : i32
    %32 = arith.cmpi eq, %arg0, %c0_i32_25 : i32
    %33 = arith.extui %32 : i1 to i32
    %c0_i32_26 = arith.constant 0 : i32
    %34 = arith.cmpi ne, %33, %c0_i32_26 : i32
    scf.if %34 {
      %c0_31 = arith.constant 0 : index
      %c0_32 = arith.constant 0 : index
      %43 = vector.load %arg5[%c0_31, %c0_32] : memref<1x384xf32, #tpu.memory_space<vmem>>, vector<1x384xf32>
      %44 = vector.broadcast %43 : vector<1x384xf32> to vector<8x384xf32>
      %45 = arith.mulf %31, %44 : vector<8x384xf32>
      %c0_33 = arith.constant 0 : index
      %c0_34 = arith.constant 0 : index
      %46 = vector.load %arg7[%c0_33, %c0_34] : memref<8x1xf32, #tpu.memory_space<vmem>>, vector<8x1xf32>
      %cst_35 = arith.constant dense<0.000000e+00> : vector<8xf32>
      %47 = vector.multi_reduction <add>, %45, %cst_35 [1] : vector<8x384xf32> to vector<8xf32>
      %48 = vector.shape_cast %47 : vector<8xf32> to vector<8x1xf32>
      %49 = arith.addf %46, %48 : vector<8x1xf32>
      %c0_36 = arith.constant 0 : index
      %c0_37 = arith.constant 0 : index
      %50 = vector.load %arg7[%c0_36, %c0_37] : memref<8x1xf32, #tpu.memory_space<vmem>>, vector<8x1xf32>
      tpu.vector_store %arg7[%c0_36, %c0_37], %49 {strides = array<i32>} : memref<8x1xf32, #tpu.memory_space<vmem>>, vector<8x1xf32>,
      %c0_38 = arith.constant 0 : index
      %c0_39 = arith.constant 0 : index
      %51 = vector.load %arg8[%c0_38, %c0_39] : memref<8x1xf32, #tpu.memory_space<vmem>>, vector<8x1xf32>
      %52 = arith.mulf %45, %45 : vector<8x384xf32>
      %cst_40 = arith.constant dense<0.000000e+00> : vector<8xf32>
      %53 = vector.multi_reduction <add>, %52, %cst_40 [1] : vector<8x384xf32> to vector<8xf32>
      %54 = vector.shape_cast %53 : vector<8xf32> to vector<8x1xf32>
      %55 = arith.addf %51, %54 : vector<8x1xf32>
      %c0_41 = arith.constant 0 : index
      %c0_42 = arith.constant 0 : index
      %56 = vector.load %arg8[%c0_41, %c0_42] : memref<8x1xf32, #tpu.memory_space<vmem>>, vector<8x1xf32>
      tpu.vector_store %arg8[%c0_41, %c0_42], %55 {strides = array<i32>} : memref<8x1xf32, #tpu.memory_space<vmem>>, vector<8x1xf32>,
    } else {
    }
    %c0_i32_27 = arith.constant 0 : i32
    %35 = arith.cmpi eq, %arg0, %c0_i32_27 : i32
    %c1_i32 = arith.constant 1 : i32
    %36 = arith.cmpi eq, %arg1, %c1_i32 : i32
    %37 = arith.andi %35, %36 : i1
    %38 = arith.extui %37 : i1 to i32
    %c0_i32_28 = arith.constant 0 : i32
    %39 = arith.cmpi ne, %38, %c0_i32_28 : i32
    scf.if %39 {
      %c0_31 = arith.constant 0 : index
      %c1_32 = arith.constant 1 : index
      %43 = vector.load %arg4[%c0_31, %c1_32] : memref<8x3xf32, #tpu.memory_space<vmem>>, vector<8x1xf32>
      %c0_33 = arith.constant 0 : index
      %c2_34 = arith.constant 2 : index
      %44 = vector.load %arg4[%c0_33, %c2_34] : memref<8x3xf32, #tpu.memory_space<vmem>>, vector<8x1xf32>
      %c0_35 = arith.constant 0 : index
      %c0_36 = arith.constant 0 : index
      %45 = vector.load %arg7[%c0_35, %c0_36] : memref<8x1xf32, #tpu.memory_space<vmem>>, vector<8x1xf32>
      %cst_37 = arith.constant 0.001953125 : f32
      %46 = vector.broadcast %cst_37 : f32 to vector<8x1xf32>
      %47 = arith.mulf %45, %46 : vector<8x1xf32>
      %c0_38 = arith.constant 0 : index
      %c0_39 = arith.constant 0 : index
      %48 = vector.load %arg8[%c0_38, %c0_39] : memref<8x1xf32, #tpu.memory_space<vmem>>, vector<8x1xf32>
      %cst_40 = arith.constant 0.001953125 : f32
      %49 = vector.broadcast %cst_40 : f32 to vector<8x1xf32>
      %50 = arith.mulf %48, %49 : vector<8x1xf32>
      %51 = arith.mulf %47, %47 : vector<8x1xf32>
      %52 = arith.subf %50, %51 : vector<8x1xf32>
      %cst_41 = arith.constant 9.99999974E-6 : f32
      %53 = vector.broadcast %cst_41 : f32 to vector<8x1xf32>
      %54 = arith.addf %52, %53 : vector<8x1xf32>
      %55 = math.rsqrt %54 : vector<8x1xf32>
      %56 = arith.mulf %55, %43 : vector<8x1xf32>
      %c0_42 = arith.constant 0 : index
      %c0_43 = arith.constant 0 : index
      %57 = vector.load %arg9[%c0_42, %c0_43] : memref<8x1xf32, #tpu.memory_space<vmem>>, vector<8x1xf32>
      tpu.vector_store %arg9[%c0_42, %c0_43], %56 {strides = array<i32>} : memref<8x1xf32, #tpu.memory_space<vmem>>, vector<8x1xf32>,
      %58 = arith.mulf %47, %56 : vector<8x1xf32>
      %59 = arith.subf %44, %58 : vector<8x1xf32>
      %c0_44 = arith.constant 0 : index
      %c0_45 = arith.constant 0 : index
      %60 = vector.load %arg10[%c0_44, %c0_45] : memref<8x1xf32, #tpu.memory_space<vmem>>, vector<8x1xf32>
      tpu.vector_store %arg10[%c0_44, %c0_45], %59 {strides = array<i32>} : memref<8x1xf32, #tpu.memory_space<vmem>>, vector<8x1xf32>,
    } else {
    }
    %c1_i32_29 = arith.constant 1 : i32
    %40 = arith.cmpi eq, %arg0, %c1_i32_29 : i32
    %41 = arith.extui %40 : i1 to i32
    %c0_i32_30 = arith.constant 0 : i32
    %42 = arith.cmpi ne, %41, %c0_i32_30 : i32
    scf.if %42 {
      %c0_31 = arith.constant 0 : index
      %c0_32 = arith.constant 0 : index
      %43 = vector.load %arg9[%c0_31, %c0_32] : memref<8x1xf32, #tpu.memory_space<vmem>>, vector<8x1xf32>
      %44 = vector.broadcast %43 : vector<8x1xf32> to vector<8x384xf32>
      %45 = arith.mulf %31, %44 : vector<8x384xf32>
      %c0_33 = arith.constant 0 : index
      %c0_34 = arith.constant 0 : index
      %46 = vector.load %arg10[%c0_33, %c0_34] : memref<8x1xf32, #tpu.memory_space<vmem>>, vector<8x1xf32>
      %47 = vector.broadcast %46 : vector<8x1xf32> to vector<8x384xf32>
      %48 = arith.addf %45, %47 : vector<8x384xf32>
      %c0_35 = arith.constant 0 : index
      %c0_36 = arith.constant 0 : index
      %c0_37 = arith.constant 0 : index
      %49 = vector.load %arg6[%c0_35, %c0_36, %c0_37] : memref<1x8x384xf32, #tpu.memory_space<vmem>>, vector<1x8x384xf32>
      %50 = vector.shape_cast %49 : vector<1x8x384xf32> to vector<8x384xf32>
      %51 = vector.shape_cast %48 : vector<8x384xf32> to vector<1x8x384xf32>
      tpu.vector_store %arg6[%c0_35, %c0_36, %c0_37], %51 {strides = array<i32>} : memref<1x8x384xf32, #tpu.memory_space<vmem>>, vector<1x8x384xf32>,
    } else {
    }
    return
  }
  func.func @transform_0(%arg0: i32, %arg1: i32) -> (i32, i32, i32) {
    %c0_i32 = arith.constant 0 : i32
    %c0_i32_0 = arith.constant 0 : i32
    %c0_i32_1 = arith.constant 0 : i32
    return %arg1, %c0_i32, %c0_i32_0 : i32, i32, i32
  }
  func.func @transform_1(%arg0: i32, %arg1: i32) -> (i32, i32) {
    %c0_i32 = arith.constant 0 : i32
    %c0_i32_0 = arith.constant 0 : i32
    %c0_i32_1 = arith.constant 0 : i32
    return %c0_i32, %c0_i32_0 : i32, i32
  }
  func.func @transform_2(%arg0: i32, %arg1: i32) -> (i32, i32) {
    %c0_i32 = arith.constant 0 : i32
    %c0_i32_0 = arith.constant 0 : i32
    %c0_i32_1 = arith.constant 0 : i32
    return %c0_i32, %c0_i32_0 : i32, i32
  }
  func.func @transform_3(%arg0: i32, %arg1: i32) -> (i32, i32) {
    %c0_i32 = arith.constant 0 : i32
    %c0_i32_0 = arith.constant 0 : i32
    %c0_i32_1 = arith.constant 0 : i32
    return %c0_i32, %c0_i32_0 : i32, i32
  }
  func.func @transform_4(%arg0: i32, %arg1: i32) -> (i32, i32, i32) {
    %0 = arith.muli %arg1, %arg0 : i32
    %c0_i32 = arith.constant 0 : i32
    %c0_i32_0 = arith.constant 0 : i32
    %c0_i32_1 = arith.constant 0 : i32
    return %0, %c0_i32, %c0_i32_0 : i32, i32, i32
  }
}

</mosaic_0001>

<bundles_post_ra>
// kernel: tpu_custom_call.1
= control target key start
LH: loop header
LB: loop body
LE: loop exit
PB: predicated region body
PF: predicated region fallthrough
CT: control target
= control target key end

     0   :  { %9 = vsyncpa [#allocation7], 0  ;;  %s1379_s0 = inlined_call_operand.hbm [shape: bf16[2,4,512], index: 0, kind: input, shape index: {}]   ;;  %s1380_s1 = inlined_call_operand.vmem [shape: bf16[8,36], index: 1, kind: input, shape index: {}]   ;;  %s1381_s2 = inlined_call_operand.vmem [shape: f32[8,3], index: 2, kind: input, shape index: {}]   ;;  %s1382_s3 = inlined_call_operand.vmem [shape: f32[1,384], index: 3, kind: input, shape index: {}]   ;;  %s1383_s4 = inlined_call_operand.hbm [shape: f32[2,8,384], index: 4, kind: output, shape index: {}]  }
   0x1   :  { %11 = vsyncpa [#allocation7 + $0x1], 0 }
   0x2   :  { %12 = vsyncpa [#allocation8], 0 }
   0x3   :  { %14 = vsyncpa [#allocation8 + $0x1], 0  ;;  %s1091_s15 = smov 0   ;;  %s1093_s16 = smov 0  }
   0x4   :  { %s1095_s17 = smov 0   ;;  %s1097_s18 = smov 0  }
   0x5   :  { %s1099_s19 = smov 0   ;;  %s1101_s20 = smov 0  }
   0x6   :  { %s1103_s21 = smov 0   ;;  %s1105_s22 = smov 0  }
   0x7   :  { %s1107_s23 = smov 0   ;;  %s1109_s24 = smov 0  }
   0x8   :  { %s1111_s25 = smov 0  }
   0x9 LB: > { %1387 = sst [smem:[#allocation12_spill]] %s1041_s24  ;;  %s737_s26 = sadd.s32 4294967295, %s1045_s25   ;;  %s1045_s25 = sphi %s1111_s25, %s20_s25   ;;  %s1041_s24 = sphi %s1109_s24, %s1398_s24   ;;  %s1037_s23 = sphi %s1107_s23, %s1406_s23   ;;  %s1033_s22 = sphi %s1105_s22, %s1396_s22   ;;  %s1029_s21 = sphi %s1103_s21, %s1405_s21   ;;  %s1025_s20 = sphi %s1101_s20, %s1404_s20   ;;  %s1021_s19 = sphi %s1099_s19, %s1403_s19   ;;  %s1017_s18 = sphi %s1097_s18, %s1402_s18   ;;  %s1013_s17 = sphi %s1095_s17, %s1401_s17   ;;  %s1009_s16 = sphi %s1093_s16, %s1400_s16   ;;  %s1005_s15 = sphi %s1091_s15, %s1399_s15  }
   0xa   : > { %s738_s27 = sadd.s32 4294967294, %s1045_s25   ;;  %s29_s28 = sadd.s32 1, %s1037_s23 }
   0xb   : > { %s32_s29 = sadd.s32 1, %s1041_s24  ;;  %p30_p0 = scmp.ge.s32.totalorder %s29_s28, 2 }
   0xc   : > { %s39_s30 = sadd.s32 1, %s1025_s20  ;;  %p46_p1 = scmp.ne.s32.totalorder %s1025_s20, %s1021_s19 }
   0xd   : > { %p47_p2 = scmp.eq.s32.totalorder %s1045_s25, 0  ;;  %s1408_s28 = smov (%p30_p0, %s29_s28), 0 }
   0xe   : > { %1388 = sst [smem:[#allocation13_spill]] %s1408_s28  ;;  %s1410_s29 = smov (!%p30_p0, %s32_s29), %s1041_s24 }
   0xf   : > { %s36_s5 = ssub.s32 %s1037_s23, %s1408_s28  ;;  %p1157_p3 = por %p47_p2, %p46_p1 }
  0x10   : > { %p34_p4 = scmp.ge.s32.totalorder %s1410_s29, 2  ;;  %p37_p5 = scmp.eq.s32.totalorder %s36_s5, 0 }
  0x11   : > { %p52_p6 = scmp.ne.s32.totalorder %s1021_s19, %s1017_s18  ;;  %p53_p7 = scmp.eq.s32.totalorder %s737_s26, 0 }
  0x12   : > { %s1412_s29 = smov (%p34_p4, %s1410_s29), 0  ;;  %s125_s9 = smul.u32 %s1037_s23, %s1041_s24 }
  0x13   : > { %1390 = sst [smem:[#allocation14_spill]] %s1412_s29  ;;  %p1167_p8 = por %p53_p7, %p52_p6 }
  0x14   : > { %s1165_s7 = scalar_select %p37_p5, %s1025_s20, %s39_s30  }
  0x15   : > { %s126_s10 = smul.u32 %s1412_s29, %s1408_s28  ;;  %s130_s11 = sadd.s32 1, %s1013_s17 }
  0x16   : > { %p140_p9 = scmp.ne.s32.totalorder %s1013_s17, %s1009_s16  ;;  %p141_p10 = scmp.eq.s32.totalorder %s737_s26, 3 }
  0x17   : > { %s127_s12 = ssub.s32 %s125_s9, %s126_s10  ;;  %p146_p11 = scmp.ne.s32.totalorder %s1009_s16, %s1005_s15 }
  0x18   : > { %p128_p12 = scmp.eq.s32.totalorder %s127_s12, 0  ;;  %p1180_p13 = por %p141_p10, %p140_p9 }
  0x19   : > { %p147_p0 = scmp.eq.s32.totalorder %s738_s27, 3  ;;  %p783_p2 = scmp.lt.s32.totalorder %s1045_s25, 4 }
  0x1a   : > { %s1185_s14 = scalar_select %p128_p12, %s1013_s17, %s130_s11  }
  0x1b   : > { %p1187_p1 = por %p147_p0, %p146_p11  ;;  %s176_s30 = sand.u32 1, %s1025_s20  }
  0x1c   : > { %s754_s5 = sshll.u32 %s1037_s23, 7  ;;  %s741_s26 = sshll.u32 %s176_s30, 3 }
  0x1d   : > { %s1393_s18 = scalar_select %p1187_p1, 1, 0 }
  0x1e   : > { %s186_s29 = scalar_lea.hbm %s1379_s0, %s754_s5  ;;  %s180_s12 = scalar_lea.vmem [#allocation6], %s741_s26 }
  0x1f   : > { %s188_s28 = sshll.u32 %s180_s12, 4  ;;  %p1199_p4 = pnand %p783_p2, %p1157_p3  ;;  %s189_s28 = int_to_ptr.vmem [resolvable:$true] %s188_s28 }
  0x20   : > { %p744_p5 = scmp.ge.s32.totalorder %s1045_s25, 1  ;;  %p193_p6 = scmp.lt.s32.totalorder %s1045_s25, 5 }
  0x21   : > { %s177_s27 = scalar_lea.sflag [#allocation7], %s176_s30  ;;  %p899_p7 = pneg %p1199_p4 }
  0x22   : > { %s910_s11 = scalar_lea.vmem %s189_s28, 128  ;;  %s1047_s9 = smov [#allocation6]  }
  0x23   : > { %p911_p9 = scmp.ne.s32.totalorder %s189_s28, %s910_s11  ;;  %s915_s5 = sshll.u32 %s1047_s9, 4  ;;  %s916_s5 = int_to_ptr.vmem [resolvable:$false] %s915_s5 }
  0x24   : > { %s917_s26 = scalar_lea.vmem %s916_s5, 256  ;;  %p918_p12 = scmp.lt.s32.totalorder %s189_s28, %s916_s5 }
  0x25   : > { %p913_p10 = pnand %p911_p9, %p899_p7  ;;  %p919_p3 = scmp.lt.s32.totalorder %s917_s26, %s910_s11 }
  0x27   : > { %p914_p11 = pneg %p913_p10  ;;  %p920_p0 = por %p919_p3, %p918_p12 }
  0x29   : > { %p921_p2 = pnand %p920_p0, %p914_p11 }
  0x2b   : > { %924 = shalt.err (!%p921_p2)
}
  0x2c   : > { %778 = dma.hbm_to_vmem [thread:$0]  (!%p1199_p4), %s186_s29, 128, %s189_s28, %s177_s27  }
  0x2d   : > { %p194_p1 = pnand %p744_p5, %p193_p6 }
  0x2e   : > { %s199_s6 = sand.u32 (!%p194_p1), 1, %s1021_s19  }
  0x2f   : > { %197 = sbr.rel (%p194_p1) target bundleno = 1137 (0x471), region = 36  ;;  %s1214_s30 = sshll.u32 (!%p194_p1), %s199_s6, 3 }
  0x30   : > { %s200_s10 = scalar_lea.sflag (!%p194_p1), [#allocation7], %s199_s6  ;;  %s203_s12 = scalar_lea.vmem (!%p194_p1), [#allocation6], %s1214_s30 }
  0x34   : > { %996 = dma.done.wait (%p1167_p8), %s200_s10, 128  }
  0x35   : > { %998 = vsyncadd (%p1167_p8), %s200_s10, 4294967168  ;;  %s225_s24 = sand.u32 1, %s1009_s16   ;;  %p230_p1 = scmp.eq.s32.totalorder %s1033_s22, 0 }
  0x36   : > { %s769_s28 = smul.u32 24, %s225_s24  ;;  %p231_p4 = scmp.eq.s32.totalorder %s1029_s21, 0 }
  0x38   : > { %p232_p5 = pnand %p231_p4, %p230_p1  ;;  %s1228_s29 = scalar_lea.vmem [#allocation9], %s769_s28 }
  0x3a   : > { %235 = sbr.rel (%p232_p5) target bundleno = 65 (0x41), region = 44 }
  0x3f   : > { %vm236_vm0 = vcmask 7168   ;;  %v1048_v0 = vmov 0.0  }
  0x40   : > { %237 = vst.msk [vmem:[#allocation2] sm:$0xff] %vm236_vm0, %v1048_v0  ;;  %238 = vst.msk [vmem:[#allocation3] sm:$0xff] %vm236_vm0, %v1048_v0 }
  0x41 PF: > { %v240_v1 = vld [vmem:[%s203_s12] sm:$0xff]  ;;  %v246_v2 = vlaneseq  ;;  %v1049_v3 = vmov 1983009808   ;;  %s1050_s8 = smov 90   ;;  %v1051_v14 = vmov 0.0   ;;  %s1052_s27 = smov 109  }
  0x42   : > { %v244_v4 = vunpack.c.l.s4 %v1049_v3  ;;  %v288_v7 = vcombine.high %v240_v1, %v240_v1  ;;  %v259_v9 = vcombine.low %v240_v1, %v240_v1  ;;  %759 = vmatprep.subr.bf16.mxu1 %v1051_v14  ;;  %s1053_s11 = smov 108   ;;  %s1054_s9 = smov 92   ;;  %v1058_v20 = vmov 0   ;;  %v436_v21 = vld [vmem:[%s1381_s2] sm:$0xff] }
  0x43   : > { %v1232_v5 = vshrl.u32 %v246_v2, 7  ;;  %s1055_s5 = smov 91   ;;  %s1056_s26 = smov 127   ;;  %487 = vmatprep.mubr.bf16.mxu0 %v1058_v20  ;;  %vm1059_vm1 = vmmov 0   ;;  %890 = vset.pattern.permute.xlu0 %v1058_v20  ;;  %vm380_vm2 = vcmask 736256   ;;  %vm384_vm3 = vcmask 1041408  }
  0x44   : > { %v245_v6 = vunpack.c.0.s8 %v244_v4  ;;  %s1057_s6 = smov 126   ;;  %765 = vmatprep.mubr.msk.bf16.mxu1 %vm1059_vm1, %v1051_v14  ;;  %s1060_s10 = smov 110   ;;  %vm344_vm4 = vcmask 883712   ;;  %vm356_vm5 = vcmask 752640   ;;  %vm332_vm6 = vcmask 891904  }
  0x45   : > { %vm368_vm7 = vcmask 744448   ;;  %vm394_vm8 = vcmask 1043456   ;;  %vm401_vm9 = vcmask 1045504   ;;  %vm284_vm10 = vcmask 1039360   ;;  %p749_p8 = scmp.ne.s32.totalorder %s1033_s22, 0 }
  0x46   : > { %v1235_v8 = vsub.s32 %v245_v6, %v1232_v5  ;;  %vm306_vm11 = vcmask 1031168   ;;  %vm319_vm12 = vcmask 900096   ;;  %vm442_vm13 = vcmask 293888  }
  0x48   : > { %v295_v10 = vrot.slane %v288_v7, %v1235_v8  ;;  %v273_v11 = vrot.slane %v240_v1, %v1235_v8  ;;  %v266_v13 = vrot.slane %v259_v9, %v1235_v8 }
  0x4a   : > { %376 = vrot.lane.b32.xlu1 %v295_v10, %s1050_s8  ;;  %372 = vrot.lane.b32.xlu0 %v273_v11, %s1050_s8  ;;  %v275_v12 = vcombine.high %v273_v11, %v273_v11  ;;  %v274_v15 = vcombine.high %v266_v13, %v266_v13  ;;  %v323_v16 = vcombine.high %v295_v10, %v295_v10 }
  0x4b   : > { %v297_v17 = vcombine.low %v295_v10, %v295_v10  ;;  %v296_v18 = vcombine.low %v273_v11, %v273_v11  ;;  %v310_v19 = vcombine.low %v266_v13, %v266_v13 }
  0x4e   : > { %328 = vrot.lane.b32.xlu0 %v295_v10, %s1052_s27  ;;  %326 = vrot.lane.b32.xlu1 %v275_v12, %s1052_s27 }
  0x52   : > { %374 = vrot.lane.b32.xlu0 %v275_v12, %s1050_s8  ;;  %338 = vrot.lane.b32.xlu1 %v274_v15, %s1053_s11 }
  0x56   : > { %340 = vrot.lane.b32.xlu0 %v273_v11, %s1053_s11  ;;  %378 = vrot.lane.b32.xlu1 %v323_v16, %s1050_s8 }
  0x5a   : > { %324 = vrot.lane.b32.xlu0 %v273_v11, %s1052_s27  ;;  %336 = vrot.lane.b32.xlu1 %v266_v13, %s1053_s11 }
  0x5e   : > { %350 = vrot.lane.b32.xlu0 %v273_v11, %s1054_s9  ;;  %352 = vrot.lane.b32.xlu1 %v297_v17, %s1054_s9 }
  0x62   : > { %330 = vrot.lane.b32.xlu0 %v323_v16, %s1052_s27  ;;  %342 = vrot.lane.b32.xlu1 %v275_v12, %s1053_s11 }
  0x66   : > { %348 = vrot.lane.b32.xlu0 %v296_v18, %s1054_s9  ;;  %362 = vrot.lane.b32.xlu1 %v266_v13, %s1055_s5 }
  0x6a   : > { %364 = vrot.lane.b32.xlu0 %v296_v18, %s1055_s5  ;;  %354 = vrot.lane.b32.xlu1 %v295_v10, %s1054_s9 }
  0x6e   : > { %360 = vrot.lane.b32.xlu0 %v310_v19, %s1055_s5  ;;  %278 = vrot.lane.b32.xlu1 %v274_v15, %s1056_s26 }
  0x72   : > { %280 = vrot.lane.b32.xlu0 %v273_v11, %s1056_s26  ;;  %366 = vrot.lane.b32.xlu1 %v273_v11, %s1055_s5 }
  0x76   : > { %276 = vrot.lane.b32.xlu0 %v266_v13, %s1056_s26  ;;  %300 = vrot.lane.b32.xlu1 %v273_v11, %s1057_s6 }
  0x7a   : > { %302 = vrot.lane.b32.xlu0 %v297_v17, %s1057_s6  ;;  %282 = vrot.lane.b32.xlu1 %v275_v12, %s1056_s26 }
  0x7e   : > { %298 = vrot.lane.b32.xlu0 %v296_v18, %s1057_s6  ;;  %313 = vrot.lane.b32.xlu1 %v266_v13, %s1060_s10 }
  0x82   : > { %315 = vrot.lane.b32.xlu0 %v296_v18, %s1060_s10  ;;  %304 = vrot.lane.b32.xlu1 %v295_v10, %s1057_s6  ;;  %v239_v10 = vld [vmem:[%s203_s12] sm:$0x3f] }
  0x83   : > { %v242_v16 = vcombine.high %v239_v10, %v239_v10 }
  0x86   : > { %311 = vrot.lane.b32.xlu0 %v310_v19, %s1060_s10  ;;  %317 = vrot.lane.b32.xlu1 %v273_v11, %s1060_s10  ;;  %v249_v11 = vrot.slane %v239_v10, %v1235_v8 }
  0x88   : > { %v257_v15 = vcombine.high %v249_v11, %v249_v11 }
  0x8a   : > { %439 = vperm.xlu0 %890, %v436_v21  }
  0xbc   : > { %v377_v22 = vpop.permute.xlu1 %376  ;;  %v373_v23 = vpop.permute.xlu0 %372 }
  0xc0   : > { %v329_v24 = vpop.permute.xlu0 %328  ;;  %v327_v25 = vpop.permute.xlu1 %326 }
  0xc1   : > { %v334_v45 = vsel %vm332_vm6, %v327_v25, %v329_v24 }
  0xc4   : > { %v375_v26 = vpop.permute.xlu0 %374  ;;  %v339_v27 = vpop.permute.xlu1 %338 }
  0xc5   : > { %v382_v28 = vsel %vm380_vm2, %v375_v26, %v377_v22  ;;  %v381_v29 = vsel %vm380_vm2, %v373_v23, %v375_v26 }
  0xc6   : > { %746 = vmatprep.subr.msk.bf16.mxu0 %vm384_vm3, %v382_v28  ;;  %v447_v30 = vsel %vm384_vm3, %v381_v29, 0 }
  0xc7   : > { %466 = vmatpush1.bf16.msra.mxu0 %v447_v30 }
  0xc8   : > { %v341_v31 = vpop.permute.xlu0 %340  ;;  %v379_v32 = vpop.permute.xlu1 %378 }
  0xc9   : > { %v383_v33 = vsel %vm380_vm2, %v377_v22, %v379_v32  ;;  %v346_v43 = vsel %vm344_vm4, %v339_v27, %v341_v31 }
  0xca   : > { %v453_v34 = vsel %vm384_vm3, %v383_v33, 0  ;;  %v416_v46 = vsel %vm384_vm3, %v334_v45, %v346_v43 }
  0xcb   : > { %760 = vmatpush3.bf16.msra.mxu1 %v453_v34 }
  0xcc   : > { %v325_v35 = vpop.permute.xlu0 %324  ;;  %v337_v36 = vpop.permute.xlu1 %336  ;;  %761 = vmatprep.subr.bf16.mxu1 %v1051_v14 }
  0xcd   : > { %v333_v49 = vsel %vm332_vm6, %v325_v35, %v327_v25  ;;  %v345_v50 = vsel %vm344_vm4, %v337_v36, %v339_v27 }
  0xce   : > { %v413_v55 = vsel %vm384_vm3, %v333_v49, %v345_v50 }
  0xd0   : > { %v351_v37 = vpop.permute.xlu0 %350  ;;  %v353_v38 = vpop.permute.xlu1 %352 }
  0xd1   : > { %v358_v44 = vsel %vm356_vm5, %v351_v37, %v353_v38 }
  0xd2   : > { %v423_v52 = vsel %vm394_vm8, %v416_v46, %v358_v44 }
  0xd4   : > { %v331_v39 = vpop.permute.xlu0 %330  ;;  %v343_v40 = vpop.permute.xlu1 %342 }
  0xd5   : > { %v335_v58 = vsel %vm332_vm6, %v329_v24, %v331_v39  ;;  %v347_v59 = vsel %vm344_vm4, %v341_v31, %v343_v40  ;;  %v435_v40 = vld [vmem:[%s1380_s1] sm:$0xf] }
  0xd6   : > { %v419_v0 = vsel %vm384_vm3, %v335_v58, %v347_v59 }
  0xd8   : > { %v349_v41 = vpop.permute.xlu0 %348  ;;  %v363_v42 = vpop.permute.xlu1 %362 }
  0xd9   : > { %v357_v53 = vsel %vm356_vm5, %v349_v41, %v351_v37 }
  0xda   : > { %v421_v61 = vsel %vm394_vm8, %v413_v55, %v357_v53 }
  0xdc   : > { %v365_v47 = vpop.permute.xlu0 %364  ;;  %v355_v48 = vpop.permute.xlu1 %354 }
  0xdd   : > { %v370_v51 = vsel %vm368_vm7, %v363_v42, %v365_v47  ;;  %v359_v62 = vsel %vm356_vm5, %v353_v38, %v355_v48 }
  0xde   : > { %v430_v54 = vsel %vm401_vm9, %v423_v52, %v370_v51  ;;  %v425_v4 = vsel %vm394_vm8, %v419_v0, %v359_v62 }
  0xdf   : > { %467 = vmatprep.subr.bf16.mxu0 %v430_v54 }
  0xe0   : > { %v361_v56 = vpop.permute.xlu0 %360  ;;  %v279_v57 = vpop.permute.xlu1 %278 }
  0xe1   : > { %v369_v60 = vsel %vm368_vm7, %v361_v56, %v363_v42 }
  0xe2   : > { %v427_v63 = vsel %vm401_vm9, %v421_v61, %v369_v60 }
  0xe3   : > { %468 = vmatpush1.bf16.msra.mxu0 %v427_v63 }
  0xe4   : > { %v281_v1 = vpop.permute.xlu0 %280  ;;  %v367_v2 = vpop.permute.xlu1 %366 }
  0xe5   : > { %v371_v3 = vsel %vm368_vm7, %v365_v47, %v367_v2  ;;  %v286_v19 = vsel %vm284_vm10, %v279_v57, %v281_v1 }
  0xe6   : > { %v433_v6 = vsel %vm401_vm9, %v425_v4, %v371_v3  ;;  %v390_v21 = vsel %vm384_vm3, %v257_v15, %v286_v19 }
  0xe7   : > { %762 = vmatpush3.bf16.msra.mxu1 %v433_v6 }
  0xe8   : > { %v277_v7 = vpop.permute.xlu0 %276  ;;  %v301_v9 = vpop.permute.xlu1 %300  ;;  %763 = vmatprep.subr.bf16.mxu1 %v1051_v14  ;;  %v256_v14 = vrot.slane %v242_v16, %v1235_v8 }
  0xe9   : > { %v285_v24 = vsel %vm284_vm10, %v277_v7, %v279_v57 }
  0xea   : > { %v387_v31 = vsel %vm384_vm3, %v249_v11, %v285_v24 }
  0xec   : > { %v303_v12 = vpop.permute.xlu0 %302  ;;  %v283_v13 = vpop.permute.xlu1 %282 }
  0xed   : > { %v308_v20 = vsel %vm306_vm11, %v301_v9, %v303_v12  ;;  %v287_v25 = vsel %vm284_vm10, %v281_v1, %v283_v13 }
  0xee   : > { %v398_v27 = vsel %vm394_vm8, %v390_v21, %v308_v20  ;;  %v393_v32 = vsel %vm384_vm3, %v256_v14, %v287_v25 }
  0xf0   : > { %v299_v17 = vpop.permute.xlu0 %298  ;;  %v314_v18 = vpop.permute.xlu1 %313 }
  0xf1   : > { %v307_v28 = vsel %vm306_vm11, %v299_v17, %v301_v9 }
  0xf2   : > { %v396_v36 = vsel %vm394_vm8, %v387_v31, %v307_v28 }
  0xf4   : > { %v316_v22 = vpop.permute.xlu0 %315  ;;  %v305_v23 = vpop.permute.xlu1 %304 }
  0xf5   : > { %v321_v26 = vsel %vm319_vm12, %v314_v18, %v316_v22  ;;  %v309_v29 = vsel %vm306_vm11, %v303_v12, %v305_v23 }
  0xf6   : > { %v406_v30 = vsel %vm401_vm9, %v398_v27, %v321_v26  ;;  %v400_v37 = vsel %vm394_vm8, %v393_v32, %v309_v29 }
  0xf7   : > { %469 = vmatprep.subr.bf16.mxu0 %v406_v30 }
  0xf8   : > { %v312_v8 = vpop.permute.xlu0 %311  ;;  %v318_v33 = vpop.permute.xlu1 %317 }
  0xf9   : > { %v320_v34 = vsel %vm319_vm12, %v312_v8, %v314_v18  ;;  %v322_v35 = vsel %vm319_vm12, %v316_v22, %v318_v33 }
  0xfa   : > { %v403_v38 = vsel %vm401_vm9, %v396_v36, %v320_v34  ;;  %v409_v39 = vsel %vm401_vm9, %v400_v37, %v322_v35 }
  0xfb   : > { %470 = vmatpush1.bf16.msra.mxu0 %v403_v38  ;;  %764 = vmatpush3.bf16.msra.mxu1 %v409_v39 }
  0xfe   : > { %747 = vmatmul.mubr.msk.bf16.vlgmr.msra.gmra.mxu0 %vm442_vm13, %v435_v40  ;;  %766 = vmatmul.mubr.msk.bf16.vlgmr.msra.gmra.mxu1 %vm442_vm13, %v435_v40 }
 0x105   : > { %v440_v41 = vpop.permute.xlu0 %439 }
 0x1be   : > { %v489_v42 = vpop.f32.mrf.mxu0  ;;  %v530_v43 = vpop.f32.mrf.mxu1 }
 0x1bf   : > { %v490_v44 = vadd.f32 %v489_v42, %v440_v41  ;;  %v531_v45 = vadd.f32 %v530_v43, %v440_v41 }
 0x1c0   : > { %v491_v46 = vpop.f32.mrf.mxu0  ;;  %v767_v47 = vpop.f32.mrf.mxu1 }
 0x1c1   : > { %v536_v48 = vmul.f32 0.2, %v490_v44  ;;  %v538_v49 = vmul.f32 0.2, %v531_v45  ;;  %v492_v50 = vadd.f32 %v491_v46, %v440_v41  ;;  %544 = sbr.rel (%p749_p8) target bundleno = 609 (0x261), region = 48 }
 0x1c2   : > { %v493_v51 = vpop.f32.mrf.mxu0  ;;  %v533_v52 = vpop.f32.mrf.mxu1 }
 0x1c3   : > { %v1293_v53 = vmax.f32 %v490_v44, %v536_v48  ;;  %v1295_v54 = vmax.f32 %v531_v45, %v538_v49  ;;  %v537_v55 = vmul.f32 0.2, %v492_v50 }
 0x1c4   : > { %v494_v56 = vpop.f32.mrf.mxu0  ;;  %v768_v57 = vpop.f32.mrf.mxu1 }
 0x1c5   : > { %v1297_v58 = vmax.f32 %v492_v50, %v537_v55 }
 0x1c6   : > { %v545_v59 = vld [vmem:[%s1382_s3] sm:$0x7]  ;;  %v549_v60 = vsub.s32 0, %v1232_v5  ;;  %v553_v61 = vsub.s32 1, %v1232_v5  ;;  %v557_v62 = vsub.s32 2, %v1232_v5  ;;  %vm571_vm14 = vcmask 7168  }
 0x1c7   : > { %v565_v15 = vld [vmem:[#allocation2] sm:$0xff]  ;;  %v573_v17 = vld [vmem:[#allocation3] sm:$0xff] }
 0x1c8   : > { %v550_v63 = vrot.slane %v545_v59, %v549_v60  ;;  %v554_v0 = vrot.slane %v545_v59, %v553_v61  ;;  %v558_v1 = vrot.slane %v545_v59, %v557_v62 }
 0x1ca   : > { %v562_v2 = vmul.f32 %v550_v63, %v1293_v53  ;;  %v563_v3 = vmul.f32 %v554_v0, %v1297_v58  ;;  %v564_v4 = vmul.f32 %v558_v1, %v1295_v54 }
 0x1cc   : > { %v566_v6 = vadd.f32 %v563_v3, %v562_v2  ;;  %v574_v7 = vmul.f32 %v562_v2, %v562_v2  ;;  %v575_v9 = vmul.f32 %v563_v3, %v563_v3  ;;  %v576_v10 = vmul.f32 %v564_v4, %v564_v4 }
 0x1ce   : > { %v567_v11 = vadd.f32 %v566_v6, %v564_v4  ;;  %v577_v12 = vadd.f32 %v575_v9, %v574_v7 }
 0x1d0   : > { %568 = vadd.xlane.f32.xlu0 %v567_v11  ;;  %v578_v13 = vadd.f32 %v577_v12, %v576_v10 }
 0x1d4   : > { %579 = vadd.xlane.f32.xlu0 %v578_v13 }
 0x259   : > { %v569_v5 = vpop.xlane.xlu0 %568 }
 0x25a   : > { %v570_v16 = vadd.f32 %v569_v5, %v565_v15 }
 0x25c   : > { %572 = vst.msk [vmem:[#allocation2] sm:$0xff] %vm571_vm14, %v570_v16 }
 0x25d   : > { %v580_v18 = vpop.xlane.xlu0 %579 }
 0x25e   : > { %v581_v19 = vadd.f32 %v580_v18, %v573_v17 }
 0x260   : > { %582 = vst.msk [vmem:[#allocation3] sm:$0xff] %vm571_vm14, %v581_v19 }
 0x261 PF: > { %p583_p6 = scmp.eq.s32.totalorder %s1029_s21, 1 }
 0x263   : > { %p584_p7 = pnand %p583_p6, %p230_p1 }
 0x264   : > { %s1061_s26 = smov (!%p584_p7), 127   ;;  %s1062_s6 = smov (!%p584_p7), 2  }
 0x265   : > { %587 = sbr.rel (%p584_p7) target bundleno = 971 (0x3cb), region = 52  ;;  %s1063_s10 = smov (!%p584_p7), 126  }
 0x26a   : > { %v588_v20 = vld [vmem:[%s1381_s2] sm:$0xff]  ;;  %v591_v22 = vld [vmem:[#allocation3] sm:$0xff]  ;;  %vm602_vm15 = vcmask 7168  }
 0x26b   : > { %598 = vrot.lane.b32.xlu0 %v588_v20, %s1061_s26  ;;  %v589_v21 = vld [vmem:[#allocation2] sm:$0xff]  ;;  %v592_v23 = vmul.f32 0.001953125, %v591_v22 }
 0x26c   : > { %v590_v14 = vmul.f32 0.001953125, %v589_v21 }
 0x26e   : > { %v593_v24 = vmul.f32 %v590_v14, %v590_v14 }
 0x270   : > { %v594_v25 = vsub.f32 %v592_v23, %v593_v24 }
 0x272   : > { %v595_v26 = vadd.f32 1e-05, %v594_v25 }
 0x274   : > { %894 = vrsqrt.f32 %v595_v26 }
 0x281   : > { %v895_v27 = vpop.eup %894 }
 0x2dd   : > { %v599_v28 = vpop.permute.xlu0 %598 }
 0x2de   : > { %v601_v29 = vmul.f32 %v895_v27, %v599_v28 }
 0x2e0   : > { %v604_v30 = vmul.f32 %v601_v29, %v590_v14  ;;  %603 = vst.msk [vmem:[#allocation4] sm:$0xff] %vm602_vm15, %v601_v29 }
 0x2e2   : > { %606 = vrot.lane.b32.xlu0 %v604_v30, %s1062_s6 }
 0x354   : > { %v607_v31 = vpop.permute.xlu0 %606 }
 0x355   : > { %v609_v32 = vsub.f32 %v588_v20, %v607_v31 }
 0x357   : > { %611 = vrot.lane.b32.xlu1 %v609_v32, %s1063_s10 }
 0x3c9   : > { %v612_v8 = vpop.permute.xlu1 %611 }
 0x3ca   : > { %614 = vst.msk [vmem:[#allocation5] sm:$0xff] %vm602_vm15, %v612_v8 }
 0x3cb PF: > { %p750_p9 = scmp.ne.s32.totalorder %s1033_s22, 1 }
 0x3cd   : > { %618 = sbr.rel (%p750_p9) target bundleno = 1112 (0x458), region = 56 }
 0x3d2   : > { %v619_v33 = vld [vmem:[#allocation4] sm:$0xff]  ;;  %v1064_v34 = vmov 0   ;;  %v628_v35 = vld [vmem:[#allocation5] sm:$0xff] }
 0x3d3   : > { %896 = vset.pattern.permute.xlu0 %v1064_v34 }
 0x3d4   : > { %622 = vperm.xlu0 %896, %v619_v33  }
 0x3d8   : > { %631 = vperm.xlu0 %896, %v628_v35  }
 0x44f   : > { %v623_v36 = vpop.permute.xlu0 %622 }
 0x450   : > { %v625_v37 = vmul.f32 %v623_v36, %v1293_v53  ;;  %v626_v38 = vmul.f32 %v623_v36, %v1297_v58  ;;  %v627_v39 = vmul.f32 %v623_v36, %v1295_v54 }
 0x453   : > { %v632_v40 = vpop.permute.xlu0 %631 }
 0x454   : > { %v634_v41 = vadd.f32 %v632_v40, %v625_v37  ;;  %v635_v42 = vadd.f32 %v632_v40, %v626_v38  ;;  %v636_v43 = vadd.f32 %v632_v40, %v627_v39 }
 0x456   : > { %637 = vst [vmem:[%s1228_s29] sm:$0xff] %v634_v41  ;;  %638 = vst [vmem:[%s1228_s29 + $0x8] sm:$0xff] %v635_v42 }
 0x457   : > { %639 = vst [vmem:[%s1228_s29 + $0x10] sm:$0xff] %v636_v43 }
 0x458 PF: > { %s648_s28 = smul.u32 %s1029_s21, %s1033_s22  ;;  %s656_s8 = sshll.u32 %s1228_s29, 4  ;;  %s657_s8 = int_to_ptr.vmem [resolvable:$true] %s656_s8 }
 0x459   : > { %s641_s9 = scalar_lea.sflag [#allocation8], %s225_s24  ;;  %s925_s5 = scalar_lea.vmem %s657_s8, 384 }
 0x45a   : > { %s770_s30 = smul.u32 384, %s648_s28  ;;  %p926_p10 = scmp.ne.s32.totalorder %s657_s8, %s925_s5 }
 0x45b   : > { %s1065_s26 = smov [#allocation9]  }
 0x45c   : > { %s654_s11 = scalar_lea.hbm %s1383_s4, %s770_s30  ;;  %p927_p11 = pnand %p926_p10, %p1180_p13 }
 0x45d   : > { %s929_s6 = sshll.u32 %s1065_s26, 4  ;;  %s930_s6 = int_to_ptr.vmem [resolvable:$false] %s929_s6 }
 0x45e   : > { %p928_p12 = pneg %p927_p11  ;;  %s931_s10 = scalar_lea.vmem %s930_s6, 768 }
 0x45f   : > { %p932_p3 = scmp.lt.s32.totalorder %s657_s8, %s930_s6  ;;  %p933_p0 = scmp.lt.s32.totalorder %s931_s10, %s925_s5 }
 0x461   : > { %p934_p2 = por %p933_p0, %p932_p3 }
 0x463   : > { %p935_p1 = pnand %p934_p2, %p928_p12 }
 0x465   : > { %938 = shalt.err (!%p935_p1)
}
 0x466   : > { %s939_s21 = scalar_lea.hbm %s654_s11, 384  ;;  %s943_s29 = scalar_lea.hbm %s1383_s4, 768 }
 0x467   : > { %p940_p4 = scmp.ne.s32.totalorder %s654_s11, %s939_s21  ;;  %p944_p6 = scmp.lt.s32.totalorder %s654_s11, %s1383_s4 }
 0x468   : > { %p945_p7 = scmp.lt.s32.totalorder %s943_s29, %s939_s21 }
 0x469   : > { %p941_p5 = pnand %p940_p4, %p1180_p13 }
 0x46a   : > { %p946_p9 = por %p945_p7, %p944_p6 }
 0x46b   : > { %p942_p8 = pneg %p941_p5 }
 0x46d   : > { %p947_p10 = pnand %p946_p9, %p942_p8 }
 0x46f   : > { %950 = shalt.err (!%p947_p10)
}
 0x470   : > { %773 = dma.vmem_to_hbm [thread:$0]  (%p1180_p13), %s657_s8, 384, %s654_s11, %s641_s9  }
 0x471 PF: > { %p784_p11 = scmp.ge.s32.totalorder %s1045_s25, 2  ;;  %s668_s12 = sand.u32 1, %s1005_s15  }
 0x472   : > { %p1395_p12 = scmp.ne.s32.totalorder %s1393_s18, 0  ;;  %s669_s27 = scalar_lea.sflag [#allocation8], %s668_s12 }
 0x474   : > { %p780_p3 = pnand %p784_p11, %p1395_p12 }
 0x476   : > { %p781_p0 = pneg %p780_p3 }
 0x478   : > { %1000 = dma.done.wait (%p781_p0), %s669_s27, 384  }
 0x479   : > { %1002 = vsyncadd (%p781_p0), %s669_s27, 4294966912  ;;  %s20_s25 = sadd.s32 1, %s1045_s25   ;;  %s1396_s22 = sld [smem:[#allocation12_spill]] }
 0x47a   : > { %p17_p2 = scmp.ge.s32.totalorder %s20_s25, 6   ;;  %s1397_s13 = sld [smem:[#allocation13_spill]] }
 0x47b   : > { %s1398_s24 = sld [smem:[#allocation14_spill]]  ;;  %s1399_s15 = smov %s1009_s16 }
 0x47c   : > { %s1400_s16 = smov %s1013_s17  ;;  %s1401_s17 = smov %s1185_s14 }
 0x47d   : > { %s1402_s18 = smov %s1021_s19  ;;  %s1403_s19 = smov %s1025_s20 }
 0x47e   : > { %s1404_s20 = smov %s1165_s7  ;;  %s1405_s21 = smov %s1037_s23 }
 0x47f   :  { %19 = sbr.rel (!%p17_p2) target bundleno = 9 (0x9), region = 97 }
 0x480   : > { %s1406_s23 = smov %s1397_s13 }
 0x484   :  { %674 = vsyncpa [#allocation7], 1 }
 0x485   :  { %676 = vsyncpa [#allocation7 + $0x1], 1 }
 0x486   :  { %677 = vsyncpa [#allocation8], 1 }
 0x487   :  { %679 = vsyncpa [#allocation8 + $0x1], 1 }

</bundles_post_ra>
